<compile_context>
chip_gen: v7x
topology: tpu7x:2x2x1
jax: 0.10.0
libtpu: 0.0.40
codegen_flags: <defaults>
</compile_context>

<pallas_src>
import math
import functools

import jax
import jax.numpy as jnp
from jax import lax
from jax.experimental import pallas as pl
from jax.experimental.pallas import tpu as pltpu


def _attention_kernel(x_ref, w_ref, b_ref, o_ref, qkv_ref, *,
                      num_heads, head_dim, v_head_dim,
                      d_in, d_out, d_out_pad, blk_b, t):
    """One grid step = blk_b batch elements (rows = blk_b * T).

    x_ref   : (rows, D_in)                 VMEM, matmul dtype
    w_ref   : (D_in, 2*D_in + D_out)       VMEM, matmul dtype, [Wq/s | Wk | Wv]
    b_ref   : (1, 2*D_in + D_out)          VMEM, f32,          [bq/s | bk | bv]
    o_ref   : (rows, D_out_pad)            VMEM, output dtype
    qkv_ref : (rows, 2*D_in + D_out)       VMEM scratch, matmul dtype
    """
    scratch_dtype = qkv_ref.dtype
    pad_cols = d_out_pad - d_out

    # --- Fused QKV projection: one wide MXU matmul, f32 accumulation, single
    #     cast into the (possibly bf16) scratch. ---
    qkv = jnp.dot(x_ref[...], w_ref[...],
                  preferred_element_type=jnp.float32) + b_ref[...]
    qkv_ref[...] = qkv.astype(scratch_dtype)

    # Hoisted zero pad for the lane-dense output store (JAX does not CSE
    # broadcast_in_dim inside loops).
    zeros_pad = (jnp.zeros((t, pad_cols), jnp.float32) if pad_cols else None)

    # --- Per-batch-element scaled-dot-product attention. Heads stay statically
    #     unrolled; the batch loop is a visible fori_loop so live ranges are
    #     bounded to one batch element. ---
    def batch_body(b, carry):
        r0 = pl.multiple_of(b * t, t)
        head_outs = []
        for h in range(num_heads):
            q0 = h * head_dim
            k0 = d_in + h * head_dim
            v0 = 2 * d_in + h * v_head_dim
            # TODO(synk): these column slices are lane-unaligned unless
            # head_dim % 128 == 0; pad per-head columns in the fused layout
            # for production head dims.
            qh = qkv_ref[pl.ds(r0, t), q0:q0 + head_dim]      # (T, hd), pre-scaled
            kh = qkv_ref[pl.ds(r0, t), k0:k0 + head_dim]      # (T, hd)
            vh = qkv_ref[pl.ds(r0, t), v0:v0 + v_head_dim]    # (T, vhd)

            # Q @ K^T contracting dim 1 of both operands (no explicit K^T).
            # TODO(synk): verify in the bundle dump this lowers without a
            # per-head vxpose; otherwise stage K^T once per block.
            scores = lax.dot_general(
                qh, kh,
                dimension_numbers=(((1,), (1,)), ((), ())),
                preferred_element_type=jnp.float32)           # (T, T) f32

            scores = scores - jnp.max(scores, axis=-1, keepdims=True)
            p = jnp.exp(scores)
            inv = pl.reciprocal(jnp.sum(p, axis=-1, keepdims=True), approx=True)
            probs = (p * inv).astype(scratch_dtype)           # softmax(dim=-1)

            head_outs.append(
                jnp.dot(probs, vh, preferred_element_type=jnp.float32))  # (T, vhd)

        out_b = jnp.concatenate(head_outs, axis=-1)           # (T, D_out) f32
        if pad_cols:
            out_b = jnp.concatenate([out_b, zeros_pad], axis=-1)
        # Lane-dense per-batch-element store (unmasked vst, bounded live range).
        o_ref[pl.ds(r0, t), :] = out_b.astype(o_ref.dtype)
        return carry

    lax.fori_loop(0, blk_b, batch_body, None, unroll=True)


def _pick_block_b(batch, t, target_rows=256, max_rows=1024):
    """Largest divisor of `batch` with blk_b*T <= max_rows, preferring
    >= target_rows (fills the 256-row MXU on v6e/v7x), while keeping the grid
    length >= 2 so both v7x TensorCores get work."""
    best = 1
    for bb in range(1, batch + 1):
        if batch % bb != 0 or bb * t > max_rows:
            continue
        best = bb
        if bb * t >= target_rows:
            break
    if batch >= 2:
        best = min(best, max(1, batch // 2))
        while batch % best != 0:
            best -= 1
    return best


def only_attention(x, wq, bq, wk, bk, wv, bv, *, num_heads,
                   matmul_dtype=jnp.bfloat16, block_b=None):
    """x: (B, T, D_in); wq/wk: (D_in, D_in); wv: (D_in, D_out); biases 1-D.

    Weights are in (in, out) layout so the kernel computes x @ W + b.
    `matmul_dtype=jnp.bfloat16` (default, recommended on v5e/v6e/v7x) casts the
    MXU inputs wrapper-side; accumulation is always f32.  Use
    `matmul_dtype=jnp.float32` for bit-tighter numerics.
    """
    B, T, D_in = x.shape
    D_out = wv.shape[1]
    assert D_in % num_heads == 0 and D_out % num_heads == 0
    head_dim = D_in // num_heads
    v_head_dim = D_out // num_heads
    total_dim = 2 * D_in + D_out
    D_out_pad = pl.cdiv(D_out, 128) * 128          # lane-dense output columns

    blk_b = block_b if block_b is not None else _pick_block_b(B, T)
    assert B % blk_b == 0
    rows = blk_b * T
    assert rows % 8 == 0 or blk_b == B, (
        "blk_b*T must be sublane-aligned (multiple of 8) or cover the full batch")

    lowp = matmul_dtype != jnp.float32

    # Parameter prep: fold 1/sqrt(head_dim) into the Q projection and fuse
    # Wq|Wk|Wv (and biases) into one wide matmul operand.
    inv_scale = 1.0 / math.sqrt(float(head_dim))
    w_fused = jnp.concatenate([wq * inv_scale, wk, wv], axis=1)       # (D_in, total_dim)
    b_fused = jnp.concatenate([bq * inv_scale, bk, bv]
                              ).reshape(1, total_dim).astype(jnp.float32)

    # Wrapper-side low-precision casts (halve DMA bytes + resident weight VMEM,
    # no per-grid-step VPU casts inside the kernel).
    x2d = x.reshape(B * T, D_in)
    if lowp:
        x2d = x2d.astype(matmul_dtype)
        w_fused = w_fused.astype(matmul_dtype)
    mm_bytes = jnp.dtype(matmul_dtype).itemsize if lowp else 4

    kernel = functools.partial(
        _attention_kernel,
        num_heads=num_heads, head_dim=head_dim, v_head_dim=v_head_dim,
        d_in=D_in, d_out=D_out, d_out_pad=D_out_pad, blk_b=blk_b, t=T)

    # VMEM budget: double-buffered x/out blocks, resident fused weight (the
    # pipeline still allocates two copies), bias, and the QKV scratch, with 2x
    # headroom, clamped to 56 MiB to leave Mosaic scratch room on v7x (64 MiB).
    est_bytes = (2 * rows * D_in * mm_bytes
                 + 2 * rows * D_out_pad * x.dtype.itemsize
                 + 2 * D_in * total_dim * mm_bytes
                 + 2 * total_dim * 4
                 + rows * total_dim * mm_bytes)
    vmem_limit = int(min(56 * 1024 * 1024, max(32 * 1024 * 1024, 2 * est_bytes)))

    # TODO(synk): for production D_in on v7x, single-buffer the constant-index
    # weight (pipeline_mode=pl.Buffered(1)) or tile total_dim on a second grid axis.
    # TODO(synk): tile the query axis flash-style (online softmax) before
    # scaling T beyond ~128; the whole-(T,T) scores tile dominates vregs there.
    out2d = pl.pallas_call(
        kernel,
        out_shape=jax.ShapeDtypeStruct((B * T, D_out_pad), x.dtype),
        grid_spec=pltpu.PrefetchScalarGridSpec(
            num_scalar_prefetch=0,
            grid=(B // blk_b,),
            in_specs=[
                pl.BlockSpec((rows, D_in), lambda i: (i, 0)),        # x rows
                pl.BlockSpec((D_in, total_dim), lambda i: (0, 0)),   # fused W (resident)
                pl.BlockSpec((1, total_dim), lambda i: (0, 0)),      # fused bias
            ],
            out_specs=pl.BlockSpec((rows, D_out_pad), lambda i: (i, 0)),
            scratch_shapes=[pltpu.VMEM(
                (rows, total_dim), matmul_dtype if lowp else jnp.float32)],
        ),
        compiler_params=pltpu.CompilerParams(
            dimension_semantics=("parallel",),
            vmem_limit_bytes=vmem_limit),
    )(x2d, w_fused, b_fused)

    return out2d.reshape(B, T, D_out_pad)[..., :D_out]


def only_attention_ref(x, wq, bq, wk, bk, wv, bv, *, num_heads):
    """Pure-JAX reference mirroring the PyTorch forward exactly."""
    B, T, D_in = x.shape
    D_out = wv.shape[1]
    head_dim = D_in // num_heads
    q = (x @ wq + bq).reshape(B, T, num_heads, head_dim).transpose(0, 2, 1, 3)
    k = (x @ wk + bk).reshape(B, T, num_heads, head_dim).transpose(0, 2, 1, 3)
    v = (x @ wv + bv).reshape(B, T, num_heads, -1).transpose(0, 2, 1, 3)
    scores = jnp.einsum("bhqd,bhkd->bhqk", q, k) / jnp.sqrt(
        jnp.array(head_dim, jnp.float32))
    probs = jax.nn.softmax(scores, axis=-1)
    out = jnp.einsum("bhqk,bhkd->bhqd", probs, v)
    return out.transpose(0, 2, 1, 3).reshape(B, T, D_out)


if __name__ == "__main__":
    # Small shapes consistent with the module.
    B, T = 2, 8
    input_dim, output_dim, num_heads = 32, 32, 8

    key = jax.random.PRNGKey(0)
    kx, kwq, kbq, kwk, kbk, kwv, kbv = jax.random.split(key, 7)

    # Deterministic parameter init (nn.Linear-style uniform bound 1/sqrt(fan_in)),
    # stored directly in (in, out) layout so the kernel computes x @ W + b.
    bound = 1.0 / math.sqrt(input_dim)
    x = jax.random.normal(kx, (B, T, input_dim), dtype=jnp.float32)
    wq = jax.random.uniform(kwq, (input_dim, input_dim), jnp.float32, -bound, bound)
    bq = jax.random.uniform(kbq, (input_dim,), jnp.float32, -bound, bound)
    wk = jax.random.uniform(kwk, (input_dim, input_dim), jnp.float32, -bound, bound)
    bk = jax.random.uniform(kbk, (input_dim,), jnp.float32, -bound, bound)
    wv = jax.random.uniform(kwv, (input_dim, output_dim), jnp.float32, -bound, bound)
    bv = jax.random.uniform(kbv, (output_dim,), jnp.float32, -bound, bound)

    ref = only_attention_ref(x, wq, bq, wk, bk, wv, bv, num_heads=num_heads)

    # f32-MXU-input path (tight tolerance — only the EUP approx reciprocal and
    # MXU f32 decomposition differ from XLA).
    out = only_attention(x, wq, bq, wk, bk, wv, bv, num_heads=num_heads,
                         matmul_dtype=jnp.float32)
    out = jax.block_until_ready(out)
    assert out.shape == (B, T, output_dim)
    assert jnp.allclose(out, ref, atol=2e-3, rtol=2e-3), "f32 path mismatch vs reference"

    # Default bf16 MXU-input path (recommended on all generations); f32
    # accumulation, tolerance loosened only for bf16 input rounding.
    out_bf16 = only_attention(x, wq, bq, wk, bk, wv, bv, num_heads=num_heads,
                              matmul_dtype=jnp.bfloat16)
    out_bf16 = jax.block_until_ready(out_bf16)
    assert jnp.allclose(out_bf16, ref, atol=3e-2, rtol=3e-2), "bf16 path mismatch vs reference"

    print("KERNEL_OK")
</pallas_src>

<mosaic_0001>
module attributes {stable_mosaic.version = 11 : i64} {
  func.func @_attention_kernel(%arg0: i32, %arg1: memref<8x32xf32, #tpu.memory_space<vmem>>, %arg2: memref<32x96xf32, #tpu.memory_space<vmem>>, %arg3: memref<1x96xf32, #tpu.memory_space<vmem>>, %arg4: memref<8x128xf32, #tpu.memory_space<vmem>>, %arg5: memref<8x96xf32, #tpu.memory_space<vmem>>) attributes {dimension_semantics = [#tpu.dimension_semantics<parallel>], iteration_bounds = array<i64: 2>, scalar_prefetch = 0 : i64, scratch_operands = 1 : i64, tpu.core_type = #tpu.core_type<tc>, window_params = [{transform_indices = @transform_0, window_bounds = array<i64: 8, 32>}, {pipeline_mode = #tpu.pipeline_mode<synchronous>, transform_indices = @transform_1, window_bounds = array<i64: 32, 96>}, {pipeline_mode = #tpu.pipeline_mode<synchronous>, transform_indices = @transform_2, window_bounds = array<i64: 1, 96>}, {transform_indices = @transform_3, window_bounds = array<i64: 8, 128>}]} {
    %c0 = arith.constant 0 : index
    %c0_0 = arith.constant 0 : index
    %0 = vector.load %arg1[%c0, %c0_0] : memref<8x32xf32, #tpu.memory_space<vmem>>, vector<8x32xf32>
    %c0_1 = arith.constant 0 : index
    %c0_2 = arith.constant 0 : index
    %1 = vector.load %arg2[%c0_1, %c0_2] : memref<32x96xf32, #tpu.memory_space<vmem>>, vector<32x96xf32>
    %cst = arith.constant dense<0.000000e+00> : vector<8x96xf32>
    %2 = tpu.matmul %0, %1, %cst {dimension_numbers = #tpu.dot_dimension_numbers<[1], [0], [0], [1], [0, 0, 1, 1], [], []>} : vector<8x32xf32>, vector<32x96xf32>, vector<8x96xf32> -> vector<8x96xf32>
    %c0_3 = arith.constant 0 : index
    %c0_4 = arith.constant 0 : index
    %3 = vector.load %arg3[%c0_3, %c0_4] : memref<1x96xf32, #tpu.memory_space<vmem>>, vector<1x96xf32>
    %4 = vector.broadcast %3 : vector<1x96xf32> to vector<8x96xf32>
    %5 = arith.addf %2, %4 : vector<8x96xf32>
    %c0_5 = arith.constant 0 : index
    %c0_6 = arith.constant 0 : index
    %6 = vector.load %arg5[%c0_5, %c0_6] : memref<8x96xf32, #tpu.memory_space<vmem>>, vector<8x96xf32>
    tpu.vector_store %arg5[%c0_5, %c0_6], %5 {strides = array<i32>} : memref<8x96xf32, #tpu.memory_space<vmem>>, vector<8x96xf32>,
    %cst_7 = arith.constant 0.000000e+00 : f32
    %7 = vector.broadcast %cst_7 : f32 to vector<8x96xf32>
    %c0_i32 = arith.constant 0 : i32
    %c8_i32 = arith.constant 8 : i32
    %8 = arith.muli %c0_i32, %c8_i32 : i32
    %9 = tpu.assume_multiple %8, 8 : i32
    %10 = arith.index_cast %9 : i32 to index
    %c0_8 = arith.constant 0 : index
    %11 = vector.load %arg5[%10, %c0_8] : memref<8x96xf32, #tpu.memory_space<vmem>>, vector<8x4xf32>
    %12 = arith.index_cast %9 : i32 to index
    %c32 = arith.constant 32 : index
    %13 = vector.load %arg5[%12, %c32] : memref<8x96xf32, #tpu.memory_space<vmem>>, vector<8x4xf32>
    %14 = arith.index_cast %9 : i32 to index
    %c64 = arith.constant 64 : index
    %15 = vector.load %arg5[%14, %c64] : memref<8x96xf32, #tpu.memory_space<vmem>>, vector<8x4xf32>
    %cst_9 = arith.constant dense<0.000000e+00> : vector<8x8xf32>
    %16 = tpu.matmul %11, %13, %cst_9 {dimension_numbers = #tpu.dot_dimension_numbers<[1], [1], [0], [0], [0, 0, 1, 0], [], []>} : vector<8x4xf32>, vector<8x4xf32>, vector<8x8xf32> -> vector<8x8xf32>
    %cst_10 = arith.constant dense<0xFF800000> : vector<8xf32>
    %17 = vector.multi_reduction <maximumf>, %16, %cst_10 [1] : vector<8x8xf32> to vector<8xf32>
    %18 = vector.shape_cast %17 : vector<8xf32> to vector<8x1xf32>
    %19 = vector.broadcast %18 : vector<8x1xf32> to vector<8x8xf32>
    %20 = arith.subf %16, %19 : vector<8x8xf32>
    %21 = math.exp %20 : vector<8x8xf32>
    %cst_11 = arith.constant dense<0.000000e+00> : vector<8xf32>
    %22 = vector.multi_reduction <add>, %21, %cst_11 [1] : vector<8x8xf32> to vector<8xf32>
    %23 = vector.shape_cast %22 : vector<8xf32> to vector<8x1xf32>
    %24 = tpu.reciprocal %23 {approx = true} : vector<8x1xf32> -> vector<8x1xf32>
    %25 = vector.broadcast %24 : vector<8x1xf32> to vector<8x8xf32>
    %26 = arith.mulf %21, %25 : vector<8x8xf32>
    %cst_12 = arith.constant dense<0.000000e+00> : vector<8x4xf32>
    %27 = tpu.matmul %26, %15, %cst_12 {dimension_numbers = #tpu.dot_dimension_numbers<[1], [0], [0], [1], [0, 0, 1, 1], [], []>} : vector<8x8xf32>, vector<8x4xf32>, vector<8x4xf32> -> vector<8x4xf32>
    %28 = arith.index_cast %9 : i32 to index
    %c4 = arith.constant 4 : index
    %29 = vector.load %arg5[%28, %c4] : memref<8x96xf32, #tpu.memory_space<vmem>>, vector<8x4xf32>
    %30 = arith.index_cast %9 : i32 to index
    %c36 = arith.constant 36 : index
    %31 = vector.load %arg5[%30, %c36] : memref<8x96xf32, #tpu.memory_space<vmem>>, vector<8x4xf32>
    %32 = arith.index_cast %9 : i32 to index
    %c68 = arith.constant 68 : index
    %33 = vector.load %arg5[%32, %c68] : memref<8x96xf32, #tpu.memory_space<vmem>>, vector<8x4xf32>
    %cst_13 = arith.constant dense<0.000000e+00> : vector<8x8xf32>
    %34 = tpu.matmul %29, %31, %cst_13 {dimension_numbers = #tpu.dot_dimension_numbers<[1], [1], [0], [0], [0, 0, 1, 0], [], []>} : vector<8x4xf32>, vector<8x4xf32>, vector<8x8xf32> -> vector<8x8xf32>
    %cst_14 = arith.constant dense<0xFF800000> : vector<8xf32>
    %35 = vector.multi_reduction <maximumf>, %34, %cst_14 [1] : vector<8x8xf32> to vector<8xf32>
    %36 = vector.shape_cast %35 : vector<8xf32> to vector<8x1xf32>
    %37 = vector.broadcast %36 : vector<8x1xf32> to vector<8x8xf32>
    %38 = arith.subf %34, %37 : vector<8x8xf32>
    %39 = math.exp %38 : vector<8x8xf32>
    %cst_15 = arith.constant dense<0.000000e+00> : vector<8xf32>
    %40 = vector.multi_reduction <add>, %39, %cst_15 [1] : vector<8x8xf32> to vector<8xf32>
    %41 = vector.shape_cast %40 : vector<8xf32> to vector<8x1xf32>
    %42 = tpu.reciprocal %41 {approx = true} : vector<8x1xf32> -> vector<8x1xf32>
    %43 = vector.broadcast %42 : vector<8x1xf32> to vector<8x8xf32>
    %44 = arith.mulf %39, %43 : vector<8x8xf32>
    %cst_16 = arith.constant dense<0.000000e+00> : vector<8x4xf32>
    %45 = tpu.matmul %44, %33, %cst_16 {dimension_numbers = #tpu.dot_dimension_numbers<[1], [0], [0], [1], [0, 0, 1, 1], [], []>} : vector<8x8xf32>, vector<8x4xf32>, vector<8x4xf32> -> vector<8x4xf32>
    %46 = arith.index_cast %9 : i32 to index
    %c8 = arith.constant 8 : index
    %47 = vector.load %arg5[%46, %c8] : memref<8x96xf32, #tpu.memory_space<vmem>>, vector<8x4xf32>
    %48 = arith.index_cast %9 : i32 to index
    %c40 = arith.constant 40 : index
    %49 = vector.load %arg5[%48, %c40] : memref<8x96xf32, #tpu.memory_space<vmem>>, vector<8x4xf32>
    %50 = arith.index_cast %9 : i32 to index
    %c72 = arith.constant 72 : index
    %51 = vector.load %arg5[%50, %c72] : memref<8x96xf32, #tpu.memory_space<vmem>>, vector<8x4xf32>
    %cst_17 = arith.constant dense<0.000000e+00> : vector<8x8xf32>
    %52 = tpu.matmul %47, %49, %cst_17 {dimension_numbers = #tpu.dot_dimension_numbers<[1], [1], [0], [0], [0, 0, 1, 0], [], []>} : vector<8x4xf32>, vector<8x4xf32>, vector<8x8xf32> -> vector<8x8xf32>
    %cst_18 = arith.constant dense<0xFF800000> : vector<8xf32>
    %53 = vector.multi_reduction <maximumf>, %52, %cst_18 [1] : vector<8x8xf32> to vector<8xf32>
    %54 = vector.shape_cast %53 : vector<8xf32> to vector<8x1xf32>
    %55 = vector.broadcast %54 : vector<8x1xf32> to vector<8x8xf32>
    %56 = arith.subf %52, %55 : vector<8x8xf32>
    %57 = math.exp %56 : vector<8x8xf32>
    %cst_19 = arith.constant dense<0.000000e+00> : vector<8xf32>
    %58 = vector.multi_reduction <add>, %57, %cst_19 [1] : vector<8x8xf32> to vector<8xf32>
    %59 = vector.shape_cast %58 : vector<8xf32> to vector<8x1xf32>
    %60 = tpu.reciprocal %59 {approx = true} : vector<8x1xf32> -> vector<8x1xf32>
    %61 = vector.broadcast %60 : vector<8x1xf32> to vector<8x8xf32>
    %62 = arith.mulf %57, %61 : vector<8x8xf32>
    %cst_20 = arith.constant dense<0.000000e+00> : vector<8x4xf32>
    %63 = tpu.matmul %62, %51, %cst_20 {dimension_numbers = #tpu.dot_dimension_numbers<[1], [0], [0], [1], [0, 0, 1, 1], [], []>} : vector<8x8xf32>, vector<8x4xf32>, vector<8x4xf32> -> vector<8x4xf32>
    %64 = arith.index_cast %9 : i32 to index
    %c12 = arith.constant 12 : index
    %65 = vector.load %arg5[%64, %c12] : memref<8x96xf32, #tpu.memory_space<vmem>>, vector<8x4xf32>
    %66 = arith.index_cast %9 : i32 to index
    %c44 = arith.constant 44 : index
    %67 = vector.load %arg5[%66, %c44] : memref<8x96xf32, #tpu.memory_space<vmem>>, vector<8x4xf32>
    %68 = arith.index_cast %9 : i32 to index
    %c76 = arith.constant 76 : index
    %69 = vector.load %arg5[%68, %c76] : memref<8x96xf32, #tpu.memory_space<vmem>>, vector<8x4xf32>
    %cst_21 = arith.constant dense<0.000000e+00> : vector<8x8xf32>
    %70 = tpu.matmul %65, %67, %cst_21 {dimension_numbers = #tpu.dot_dimension_numbers<[1], [1], [0], [0], [0, 0, 1, 0], [], []>} : vector<8x4xf32>, vector<8x4xf32>, vector<8x8xf32> -> vector<8x8xf32>
    %cst_22 = arith.constant dense<0xFF800000> : vector<8xf32>
    %71 = vector.multi_reduction <maximumf>, %70, %cst_22 [1] : vector<8x8xf32> to vector<8xf32>
    %72 = vector.shape_cast %71 : vector<8xf32> to vector<8x1xf32>
    %73 = vector.broadcast %72 : vector<8x1xf32> to vector<8x8xf32>
    %74 = arith.subf %70, %73 : vector<8x8xf32>
    %75 = math.exp %74 : vector<8x8xf32>
    %cst_23 = arith.constant dense<0.000000e+00> : vector<8xf32>
    %76 = vector.multi_reduction <add>, %75, %cst_23 [1] : vector<8x8xf32> to vector<8xf32>
    %77 = vector.shape_cast %76 : vector<8xf32> to vector<8x1xf32>
    %78 = tpu.reciprocal %77 {approx = true} : vector<8x1xf32> -> vector<8x1xf32>
    %79 = vector.broadcast %78 : vector<8x1xf32> to vector<8x8xf32>
    %80 = arith.mulf %75, %79 : vector<8x8xf32>
    %cst_24 = arith.constant dense<0.000000e+00> : vector<8x4xf32>
    %81 = tpu.matmul %80, %69, %cst_24 {dimension_numbers = #tpu.dot_dimension_numbers<[1], [0], [0], [1], [0, 0, 1, 1], [], []>} : vector<8x8xf32>, vector<8x4xf32>, vector<8x4xf32> -> vector<8x4xf32>
    %82 = arith.index_cast %9 : i32 to index
    %c16 = arith.constant 16 : index
    %83 = vector.load %arg5[%82, %c16] : memref<8x96xf32, #tpu.memory_space<vmem>>, vector<8x4xf32>
    %84 = arith.index_cast %9 : i32 to index
    %c48 = arith.constant 48 : index
    %85 = vector.load %arg5[%84, %c48] : memref<8x96xf32, #tpu.memory_space<vmem>>, vector<8x4xf32>
    %86 = arith.index_cast %9 : i32 to index
    %c80 = arith.constant 80 : index
    %87 = vector.load %arg5[%86, %c80] : memref<8x96xf32, #tpu.memory_space<vmem>>, vector<8x4xf32>
    %cst_25 = arith.constant dense<0.000000e+00> : vector<8x8xf32>
    %88 = tpu.matmul %83, %85, %cst_25 {dimension_numbers = #tpu.dot_dimension_numbers<[1], [1], [0], [0], [0, 0, 1, 0], [], []>} : vector<8x4xf32>, vector<8x4xf32>, vector<8x8xf32> -> vector<8x8xf32>
    %cst_26 = arith.constant dense<0xFF800000> : vector<8xf32>
    %89 = vector.multi_reduction <maximumf>, %88, %cst_26 [1] : vector<8x8xf32> to vector<8xf32>
    %90 = vector.shape_cast %89 : vector<8xf32> to vector<8x1xf32>
    %91 = vector.broadcast %90 : vector<8x1xf32> to vector<8x8xf32>
    %92 = arith.subf %88, %91 : vector<8x8xf32>
    %93 = math.exp %92 : vector<8x8xf32>
    %cst_27 = arith.constant dense<0.000000e+00> : vector<8xf32>
    %94 = vector.multi_reduction <add>, %93, %cst_27 [1] : vector<8x8xf32> to vector<8xf32>
    %95 = vector.shape_cast %94 : vector<8xf32> to vector<8x1xf32>
    %96 = tpu.reciprocal %95 {approx = true} : vector<8x1xf32> -> vector<8x1xf32>
    %97 = vector.broadcast %96 : vector<8x1xf32> to vector<8x8xf32>
    %98 = arith.mulf %93, %97 : vector<8x8xf32>
    %cst_28 = arith.constant dense<0.000000e+00> : vector<8x4xf32>
    %99 = tpu.matmul %98, %87, %cst_28 {dimension_numbers = #tpu.dot_dimension_numbers<[1], [0], [0], [1], [0, 0, 1, 1], [], []>} : vector<8x8xf32>, vector<8x4xf32>, vector<8x4xf32> -> vector<8x4xf32>
    %100 = arith.index_cast %9 : i32 to index
    %c20 = arith.constant 20 : index
    %101 = vector.load %arg5[%100, %c20] : memref<8x96xf32, #tpu.memory_space<vmem>>, vector<8x4xf32>
    %102 = arith.index_cast %9 : i32 to index
    %c52 = arith.constant 52 : index
    %103 = vector.load %arg5[%102, %c52] : memref<8x96xf32, #tpu.memory_space<vmem>>, vector<8x4xf32>
    %104 = arith.index_cast %9 : i32 to index
    %c84 = arith.constant 84 : index
    %105 = vector.load %arg5[%104, %c84] : memref<8x96xf32, #tpu.memory_space<vmem>>, vector<8x4xf32>
    %cst_29 = arith.constant dense<0.000000e+00> : vector<8x8xf32>
    %106 = tpu.matmul %101, %103, %cst_29 {dimension_numbers = #tpu.dot_dimension_numbers<[1], [1], [0], [0], [0, 0, 1, 0], [], []>} : vector<8x4xf32>, vector<8x4xf32>, vector<8x8xf32> -> vector<8x8xf32>
    %cst_30 = arith.constant dense<0xFF800000> : vector<8xf32>
    %107 = vector.multi_reduction <maximumf>, %106, %cst_30 [1] : vector<8x8xf32> to vector<8xf32>
    %108 = vector.shape_cast %107 : vector<8xf32> to vector<8x1xf32>
    %109 = vector.broadcast %108 : vector<8x1xf32> to vector<8x8xf32>
    %110 = arith.subf %106, %109 : vector<8x8xf32>
    %111 = math.exp %110 : vector<8x8xf32>
    %cst_31 = arith.constant dense<0.000000e+00> : vector<8xf32>
    %112 = vector.multi_reduction <add>, %111, %cst_31 [1] : vector<8x8xf32> to vector<8xf32>
    %113 = vector.shape_cast %112 : vector<8xf32> to vector<8x1xf32>
    %114 = tpu.reciprocal %113 {approx = true} : vector<8x1xf32> -> vector<8x1xf32>
    %115 = vector.broadcast %114 : vector<8x1xf32> to vector<8x8xf32>
    %116 = arith.mulf %111, %115 : vector<8x8xf32>
    %cst_32 = arith.constant dense<0.000000e+00> : vector<8x4xf32>
    %117 = tpu.matmul %116, %105, %cst_32 {dimension_numbers = #tpu.dot_dimension_numbers<[1], [0], [0], [1], [0, 0, 1, 1], [], []>} : vector<8x8xf32>, vector<8x4xf32>, vector<8x4xf32> -> vector<8x4xf32>
    %118 = arith.index_cast %9 : i32 to index
    %c24 = arith.constant 24 : index
    %119 = vector.load %arg5[%118, %c24] : memref<8x96xf32, #tpu.memory_space<vmem>>, vector<8x4xf32>
    %120 = arith.index_cast %9 : i32 to index
    %c56 = arith.constant 56 : index
    %121 = vector.load %arg5[%120, %c56] : memref<8x96xf32, #tpu.memory_space<vmem>>, vector<8x4xf32>
    %122 = arith.index_cast %9 : i32 to index
    %c88 = arith.constant 88 : index
    %123 = vector.load %arg5[%122, %c88] : memref<8x96xf32, #tpu.memory_space<vmem>>, vector<8x4xf32>
    %cst_33 = arith.constant dense<0.000000e+00> : vector<8x8xf32>
    %124 = tpu.matmul %119, %121, %cst_33 {dimension_numbers = #tpu.dot_dimension_numbers<[1], [1], [0], [0], [0, 0, 1, 0], [], []>} : vector<8x4xf32>, vector<8x4xf32>, vector<8x8xf32> -> vector<8x8xf32>
    %cst_34 = arith.constant dense<0xFF800000> : vector<8xf32>
    %125 = vector.multi_reduction <maximumf>, %124, %cst_34 [1] : vector<8x8xf32> to vector<8xf32>
    %126 = vector.shape_cast %125 : vector<8xf32> to vector<8x1xf32>
    %127 = vector.broadcast %126 : vector<8x1xf32> to vector<8x8xf32>
    %128 = arith.subf %124, %127 : vector<8x8xf32>
    %129 = math.exp %128 : vector<8x8xf32>
    %cst_35 = arith.constant dense<0.000000e+00> : vector<8xf32>
    %130 = vector.multi_reduction <add>, %129, %cst_35 [1] : vector<8x8xf32> to vector<8xf32>
    %131 = vector.shape_cast %130 : vector<8xf32> to vector<8x1xf32>
    %132 = tpu.reciprocal %131 {approx = true} : vector<8x1xf32> -> vector<8x1xf32>
    %133 = vector.broadcast %132 : vector<8x1xf32> to vector<8x8xf32>
    %134 = arith.mulf %129, %133 : vector<8x8xf32>
    %cst_36 = arith.constant dense<0.000000e+00> : vector<8x4xf32>
    %135 = tpu.matmul %134, %123, %cst_36 {dimension_numbers = #tpu.dot_dimension_numbers<[1], [0], [0], [1], [0, 0, 1, 1], [], []>} : vector<8x8xf32>, vector<8x4xf32>, vector<8x4xf32> -> vector<8x4xf32>
    %136 = arith.index_cast %9 : i32 to index
    %c28 = arith.constant 28 : index
    %137 = vector.load %arg5[%136, %c28] : memref<8x96xf32, #tpu.memory_space<vmem>>, vector<8x4xf32>
    %138 = arith.index_cast %9 : i32 to index
    %c60 = arith.constant 60 : index
    %139 = vector.load %arg5[%138, %c60] : memref<8x96xf32, #tpu.memory_space<vmem>>, vector<8x4xf32>
    %140 = arith.index_cast %9 : i32 to index
    %c92 = arith.constant 92 : index
    %141 = vector.load %arg5[%140, %c92] : memref<8x96xf32, #tpu.memory_space<vmem>>, vector<8x4xf32>
    %cst_37 = arith.constant dense<0.000000e+00> : vector<8x8xf32>
    %142 = tpu.matmul %137, %139, %cst_37 {dimension_numbers = #tpu.dot_dimension_numbers<[1], [1], [0], [0], [0, 0, 1, 0], [], []>} : vector<8x4xf32>, vector<8x4xf32>, vector<8x8xf32> -> vector<8x8xf32>
    %cst_38 = arith.constant dense<0xFF800000> : vector<8xf32>
    %143 = vector.multi_reduction <maximumf>, %142, %cst_38 [1] : vector<8x8xf32> to vector<8xf32>
    %144 = vector.shape_cast %143 : vector<8xf32> to vector<8x1xf32>
    %145 = vector.broadcast %144 : vector<8x1xf32> to vector<8x8xf32>
    %146 = arith.subf %142, %145 : vector<8x8xf32>
    %147 = math.exp %146 : vector<8x8xf32>
    %cst_39 = arith.constant dense<0.000000e+00> : vector<8xf32>
    %148 = vector.multi_reduction <add>, %147, %cst_39 [1] : vector<8x8xf32> to vector<8xf32>
    %149 = vector.shape_cast %148 : vector<8xf32> to vector<8x1xf32>
    %150 = tpu.reciprocal %149 {approx = true} : vector<8x1xf32> -> vector<8x1xf32>
    %151 = vector.broadcast %150 : vector<8x1xf32> to vector<8x8xf32>
    %152 = arith.mulf %147, %151 : vector<8x8xf32>
    %cst_40 = arith.constant dense<0.000000e+00> : vector<8x4xf32>
    %153 = tpu.matmul %152, %141, %cst_40 {dimension_numbers = #tpu.dot_dimension_numbers<[1], [0], [0], [1], [0, 0, 1, 1], [], []>} : vector<8x8xf32>, vector<8x4xf32>, vector<8x4xf32> -> vector<8x4xf32>
    %154 = tpu.concatenate %27, %45, %63, %81, %99, %117, %135, %153 in 1 : vector<8x4xf32>, vector<8x4xf32>, vector<8x4xf32>, vector<8x4xf32>, vector<8x4xf32>, vector<8x4xf32>, vector<8x4xf32>, vector<8x4xf32> -> vector<8x32xf32>
    %155 = tpu.concatenate %154, %7 in 1 : vector<8x32xf32>, vector<8x96xf32> -> vector<8x128xf32>
    %156 = arith.index_cast %9 : i32 to index
    %c0_41 = arith.constant 0 : index
    %157 = vector.load %arg4[%156, %c0_41] : memref<8x128xf32, #tpu.memory_space<vmem>>, vector<8x128xf32>
    tpu.vector_store %arg4[%156, %c0_41], %155 {strides = array<i32>} : memref<8x128xf32, #tpu.memory_space<vmem>>, vector<8x128xf32>,
    %c1_i32 = arith.constant 1 : i32
    return
  }
  func.func @transform_0(%arg0: i32) -> (i32, i32) {
    %c0_i32 = arith.constant 0 : i32
    %c0_i32_0 = arith.constant 0 : i32
    return %arg0, %c0_i32 : i32, i32
  }
  func.func @transform_1(%arg0: i32) -> (i32, i32) {
    %c0_i32 = arith.constant 0 : i32
    %c0_i32_0 = arith.constant 0 : i32
    %c0_i32_1 = arith.constant 0 : i32
    return %c0_i32, %c0_i32_0 : i32, i32
  }
  func.func @transform_2(%arg0: i32) -> (i32, i32) {
    %c0_i32 = arith.constant 0 : i32
    %c0_i32_0 = arith.constant 0 : i32
    %c0_i32_1 = arith.constant 0 : i32
    return %c0_i32, %c0_i32_0 : i32, i32
  }
  func.func @transform_3(%arg0: i32) -> (i32, i32) {
    %c0_i32 = arith.constant 0 : i32
    %c0_i32_0 = arith.constant 0 : i32
    return %arg0, %c0_i32 : i32, i32
  }
}

</mosaic_0001>

<bundles_post_ra>
// kernel: tpu_custom_call.1
= control target key start
LH: loop header
LB: loop body
LE: loop exit
PB: predicated region body
PF: predicated region fallthrough
CT: control target
= control target key end

     0   :  { %8 = vsyncpa [#allocation4], 0  ;;  %s2580_s0 = inlined_call_operand.hbm [shape: f32[16,32], index: 0, kind: input, shape index: {}]   ;;  %s2581_s1 = inlined_call_operand.hbm [shape: f32[32,96], index: 1, kind: input, shape index: {}]   ;;  %s2582_s2 = inlined_call_operand.vmem [shape: f32[1,96], index: 2, kind: input, shape index: {}]   ;;  %s2583_s3 = inlined_call_operand.hbm [shape: f32[16,128], index: 3, kind: output, shape index: {}]  }
   0x1   :  { %10 = vsyncpa [#allocation4 + $0x1], 0 }
   0x2   :  { %11 = vsyncpa [#allocation7], 0 }
   0x3   :  { %12 = vsyncpa [#allocation5], 0 }
   0x4   :  { %14 = vsyncpa [#allocation5 + $0x1], 0  ;;  %s2233_s12 = smov 0   ;;  %s2235_s13 = smov 0  }
   0x5   :  { %s2237_s14 = smov 0   ;;  %s2239_s15 = smov 0  }
   0x6 LB: > { %s2254_s16 = sadd.s32 4294967295, %s2173_s15   ;;  %s1747_s17 = sadd.s32 4294967294, %s2173_s15   ;;  %s2173_s15 = sphi %s2239_s15, %s2603_s15   ;;  %s2169_s14 = sphi %s2237_s14, %s2602_s14   ;;  %s2165_s13 = sphi %s2235_s13, %s2601_s13   ;;  %s2161_s12 = sphi %s2233_s12, %s2600_s12  }
   0x7   : > { %p40_p0 = scmp.ne.s32.totalorder %s2165_s13, %s2161_s12  ;;  %p2584_p1 = scmp.eq.s32.totalorder %s2254_s16, 0 }
   0x8   : > { %p112_p3 = scmp.eq.s32.totalorder %s1747_s17, 1  ;;  %p1748_p5 = scmp.ge.s32.totalorder %s2173_s15, 1 }
   0x9   : > { %p2263_p4 = por %p2584_p1, %p40_p0  ;;  %p119_p7 = scmp.lt.s32.totalorder %s2173_s15, 3 }
   0xa   : > { %p2268_p6 = por %p112_p3, %p40_p0  ;;  %s2175_s21 = smov [#allocation6]  }
   0xb   : > { %s2587_s18 = scalar_select %p2263_p4, 1, 0 }
   0xc   : > { %s2588_s19 = scalar_select %p2268_p6, 1, 0 }
   0xd   : > { %p2273_p8 = pnand %p1748_p5, %p119_p7  ;;  %s131_s22 = sshll.u32 %s2175_s21, 4  ;;  %s2277_s22 = int_to_ptr.vmem [resolvable:$true] %s131_s22 }
   0xe   : > { %s2289_s24 = sadd.s32 1, %s2173_s15   ;;  %s27_s25 = sadd.s32 1, %s2169_s14 }
   0xf   : > { %s2589_s20 = scalar_select %p2273_p8, 1, 0 }
  0x10   : > { %p1929_p9 = pneg %p2273_p8  ;;  %s24_s26 = ssub.s32 %s2173_s15, %s2289_s24 }
  0x11   : > { %s2045_s29 = scalar_lea.hbm %s2581_s1, 512 }
  0x12   : > { %p2284_p11 = pnand %p1929_p9, %p2584_p1  ;;  %p2046_p12 = scmp.ne.s32.totalorder %s2581_s1, %s2045_s29 }
  0x13   : > { %p2052_p5 = scmp.lt.u32.totalorder %s2045_s29, %s2581_s1 }
  0x14   : > { %p2047_p13 = pneg %p2284_p11 }
  0x16   : > { %p2048_p0 = pnand %p2047_p13, %p2046_p12 }
  0x18   : > { %p2049_p3 = pneg %p2048_p0 }
  0x1a   : > { %p2054_p7 = pnand %p2052_p5, %p2049_p3 }
  0x1c   : > { %2057 = shalt.err (!%p2054_p7)
}
  0x1d   : > { %s2058_s7 = scalar_lea.vmem %s2277_s22, 512  ;;  %p2066_p2 = scmp.lt.s32.totalorder %s2277_s22, %s2277_s22 }
  0x1e   : > { %p2059_p9 = scmp.ne.s32.totalorder %s2277_s22, %s2058_s7  ;;  %p2067_p6 = scmp.lt.s32.totalorder %s2058_s7, %s2058_s7 }
  0x20   : > { %p2061_p10 = pnand %p2059_p9, %p2047_p13  ;;  %p2068_p4 = por %p2067_p6, %p2066_p2 }
  0x22   : > { %p2062_p1 = pneg %p2061_p10 }
  0x24   : > { %p2069_p8 = pnand %p2068_p4, %p2062_p1 }
  0x26   : > { %2072 = shalt.err (!%p2069_p8)
}
  0x27   : > { %s2176_s8 = smov 128   ;;  %s2177_s9 = smov 8  }
  0x28   : > { %1932 = dma.hbm_to_vmem [thread:$0]  (!%p2284_p11), %s2581_s1, 512, %s2277_s22, [#allocation7], %s2176_s8, %s2176_s8, %s2177_s9  }
  0x29   : > { %p25_p2 = scmp.eq.s32.totalorder %s24_s26, 0  ;;  %p34_p1 = scmp.ne.s32.totalorder %s2169_s14, %s2165_s13 }
  0x2a   : > { %p35_p4 = scmp.eq.s32.totalorder %s2173_s15, 0  ;;  %p1942_p6 = scmp.lt.s32.totalorder %s2173_s15, 2 }
  0x2b   : > { %s2320_s17 = scalar_select %p25_p2, %s2169_s14, %s27_s25  }
  0x2c   : > { %p36_p8 = por %p35_p4, %p34_p1  ;;  %p2591_p10 = scmp.eq.s32.totalorder %s2254_s16, 1 }
  0x2d   : > { %s148_s27 = sand.u32 1, %s2169_s14   ;;  %s1752_s28 = sshll.u32 %s2173_s15, 7 }
  0x2e   : > { %p2324_p12 = por %p2591_p10, %p34_p1  ;;  %s1751_s29 = sshll.u32 %s148_s27, 3 }
  0x2f   : > { %s2333_s4 = scalar_lea.hbm %s2580_s0, %s1752_s28  ;;  %s152_s22 = scalar_lea.vmem [#allocation3], %s1751_s29 }
  0x30   : > { %s159_s25 = sshll.u32 %s152_s22, 4  ;;  %p2335_p11 = pnand %p1942_p6, %p36_p8  ;;  %s2339_s25 = int_to_ptr.vmem [resolvable:$true] %s159_s25 }
  0x31   : > { %s149_s5 = scalar_lea.sflag [#allocation4], %s148_s27  ;;  %s2073_s6 = scalar_lea.hbm %s2333_s4, 128 }
  0x32   : > { %p2074_p13 = scmp.ne.s32.totalorder %s2333_s4, %s2073_s6  ;;  %p2075_p0 = pneg %p2335_p11 }
  0x33   : > { %s2078_s9 = scalar_lea.hbm %s2580_s0, 256  ;;  %p2079_p7 = scmp.lt.u32.totalorder %s2333_s4, %s2580_s0 }
  0x34   : > { %p2076_p3 = pnand %p2075_p0, %p2074_p13  ;;  %p2080_p9 = scmp.lt.u32.totalorder %s2078_s9, %s2073_s6 }
  0x35   : > { %p2082_p1 = scmp.lt.u32.totalorder %s2073_s6, %s2333_s4 }
  0x36   : > { %p2077_p5 = pneg %p2076_p3  ;;  %p2081_p2 = por %p2080_p9, %p2079_p7 }
  0x38   : > { %p2083_p4 = por %p2082_p1, %p2081_p2 }
  0x3a   : > { %p2084_p6 = pnand %p2083_p4, %p2077_p5 }
  0x3c   : > { %2087 = shalt.err (!%p2084_p6)
}
  0x3d   : > { %s2088_s27 = scalar_lea.vmem %s2339_s25, 128  ;;  %s2178_s28 = smov [#allocation3]  }
  0x3e   : > { %p2089_p8 = scmp.ne.s32.totalorder %s2339_s25, %s2088_s27  ;;  %s2093_s29 = sshll.u32 %s2178_s28, 4  ;;  %s2094_s29 = int_to_ptr.vmem [resolvable:$false] %s2093_s29 }
  0x3f   : > { %s2095_s23 = scalar_lea.vmem %s2094_s29, 256  ;;  %p2096_p3 = scmp.lt.s32.totalorder %s2339_s25, %s2094_s29 }
  0x40   : > { %p2091_p10 = pnand %p2089_p8, %p2075_p0  ;;  %p2097_p7 = scmp.lt.s32.totalorder %s2095_s23, %s2088_s27 }
  0x42   : > { %p2092_p13 = pneg %p2091_p10  ;;  %p2098_p9 = por %p2097_p7, %p2096_p3 }
  0x44   : > { %p2099_p2 = pnand %p2098_p9, %p2092_p13 }
  0x46   : > { %2102 = shalt.err (!%p2099_p2)
}
  0x47   : > { %1936 = dma.hbm_to_vmem [thread:$0]  (!%p2335_p11), %s2333_s4, 128, %s2339_s25, %s149_s5  }
  0x48   : > { %p2594_p5 = scmp.ne.s32.totalorder %s2589_s20, 0 }
  0x49   : > { %s2369_s30 = sand.u32 (!%p2594_p5), 1, %s2165_s13   ;;  %p2595_p0 = scmp.ne.s32.totalorder (!%p2594_p5), %s2587_s18, 0 }
  0x4a   : > { %168 = sbr.rel (%p2594_p5) target bundleno = 1377 (0x561), region = 32  ;;  %s1754_s22 = sshll.u32 (!%p2594_p5), %s2369_s30, 3 }
  0x4b   : > { %s171_s6 = scalar_lea.sflag (!%p2594_p5), [#allocation4], %s2369_s30  ;;  %s174_s7 = scalar_lea.vmem (!%p2594_p5), [#allocation3], %s1754_s22 }
  0x51   : > { %2148 = dma.done.wait (%p2595_p0), %s171_s6, 128  }
  0x52   : > { %2150 = vsyncadd (%p2595_p0), %s171_s6, 4294967168  ;;  %p2596_p11 = scmp.eq.s32.totalorder %s2254_s16, 0 }
  0x54   : > { %2152 = dma.done.wait (%p2596_p11), [#allocation7], 512   ;;  %p2597_p1 = pmov %p2596_p11 }
  0x55   : > { %v2179_v0 = vmov 0.0|0.0   ;;  %vm2180_vm0 = vmmov 0   ;;  %v2181_v1 = vmov 0.0   ;;  %v202_v2 = vld [vmem:[#allocation6] sm:$0xff]  ;;  %v203_v3 = vld [vmem:[#allocation6 + $0x8] sm:$0xff]  ;;  %v204_v4 = vld [vmem:[#allocation6 + $0x10] sm:$0xff] }
  0x56   : > { %2154 = vsyncadd (%p2597_p1), [#allocation7], 4294966784  ;;  %1915 = vmatprep.subr.bf16.mxu0 %v2179_v0  ;;  %1832 = vmatprep.mubr.msk.f32.mxu0 %vm2180_vm0, %v2181_v1  ;;  %v1916_v5 = vpack.c.bf16 %v203_v3, %v202_v2  ;;  %v205_v6 = vld [vmem:[#allocation6 + $0x18] sm:$0xff]  ;;  %vm213_vm1 = vcmask 261120   ;;  %v1757_v9 = vld [vmem:[%s2582_s2] ss:$0 sm:$0xff] }
  0x57   : > { %1835 = vmatprep.subr.mxu1 %v2181_v1  ;;  %1837 = vmatprep.mubr.msk.f32.mxu1 %vm2180_vm0, %v2181_v1  ;;  %v1919_v7 = vpack.c.bf16 %v205_v6, %v204_v4  ;;  %v201_v8 = vld [vmem:[%s174_s7] sm:$0xff]  ;;  %vm287_vm2 = vcmask 785408   ;;  %s2182_s4 = smov 124   ;;  %s2183_s25 = smov 96   ;;  %vm293_vm3 = vcmask 31744   ;;  %vm368_vm4 = vcmask 64512  }
  0x58   : > { %1917 = vmatpush3.bf16.msra.mxu0 %v1916_v5  ;;  %s2184_s26 = smov 88   ;;  %s2185_s5 = smov 92   ;;  %vm1641_vm5 = vcmask 97280   ;;  %vm1643_vm6 = vcmask 130048   ;;  %vm1645_vm7 = vcmask 162816   ;;  %vm1647_vm8 = vcmask 195584  }
  0x59   : > { %1918 = vmatprep.subr.bf16.mxu0 %v2179_v0  ;;  %s2186_s8 = smov 84   ;;  %s2187_s9 = smov 120   ;;  %vm1649_vm9 = vcmask 228352  }
  0x5a   : > { %s2188_s10 = smov 80   ;;  %s2189_s11 = smov 116  }
  0x5b   : > { %s2190_s27 = smov 76   ;;  %s2191_s28 = smov 112  }
  0x5c   : > { %1920 = vmatpush3.bf16.msra.mxu0 %v1919_v7  ;;  %s2192_s29 = smov 72   ;;  %s2193_s23 = smov 108  }
  0x5d   : > { %1845 = vmatprep.subr.mxu0 %v2181_v1  ;;  %s2194_s6 = smov 68   ;;  %s2195_s7 = smov 104  }
  0x5e   : > { %s2196_s18 = smov 64   ;;  %s2197_s20 = smov 100  }
  0x5f   : > { %1833 = vmatmul.mubr.msk.f32.vlgmr.msra.gmra.mrb[0].mxu0 %vm213_vm1, %v201_v8 }
  0x60   : > { %1847 = vmatprep.mubr.msk.f32.mxu0 %vm2180_vm0, %v2181_v1 }
 0x132   : > { %v283_v10 = vpop.f32.mrb[0].mxu0 }
 0x133   : > { %v284_v11 = vadd.f32 %v1757_v9, %v283_v10  ;;  %v1834_v12 = vpop.f32.mrb[1].mxu0 }
 0x135   : > { %288 = vst.msk [vmem:[#allocation2] sm:$0xff] %vm287_vm2, %v284_v11 }
 0x13c   : > { %v2395_v13 = vld [vmem:[#allocation2] sm:$0xff] }
 0x13d   : > { %456 = vrot.lane.b32.xlu1 %v2395_v13, %s2182_s4  ;;  %291 = vrot.lane.b32.xlu0 %v2395_v13, %s2183_s25  ;;  %s2198_s4 = smov 56   ;;  %s2199_s25 = smov 60  }
 0x141   : > { %623 = vrot.lane.b32.xlu1 %v2395_v13, %s2184_s26  ;;  %458 = vrot.lane.b32.xlu0 %v2395_v13, %s2185_s5  ;;  %s2200_s26 = smov 52   ;;  %s2201_s5 = smov 48  }
 0x145   : > { %788 = vrot.lane.b32.xlu1 %v2395_v13, %s2186_s8  ;;  %621 = vrot.lane.b32.xlu0 %v2395_v13, %s2187_s9  ;;  %s2202_s8 = smov 44   ;;  %s2203_s9 = smov 40  }
 0x149   : > { %953 = vrot.lane.b32.xlu1 %v2395_v13, %s2188_s10  ;;  %786 = vrot.lane.b32.xlu0 %v2395_v13, %s2189_s11  ;;  %s2204_s10 = smov 36   ;;  %s2205_s11 = smov 4  }
 0x14d   : > { %1118 = vrot.lane.b32.xlu1 %v2395_v13, %s2190_s27  ;;  %951 = vrot.lane.b32.xlu0 %v2395_v13, %s2191_s28  ;;  %s2206_s27 = smov 8   ;;  %s2207_s28 = smov 12  }
 0x151   : > { %1283 = vrot.lane.b32.xlu1 %v2395_v13, %s2192_s29  ;;  %1116 = vrot.lane.b32.xlu0 %v2395_v13, %s2193_s23  ;;  %s2208_s29 = smov 16   ;;  %s2209_s23 = smov 20  }
 0x155   : > { %1448 = vrot.lane.b32.xlu1 %v2395_v13, %s2194_s6  ;;  %1281 = vrot.lane.b32.xlu0 %v2395_v13, %s2195_s7  ;;  %s2210_s6 = smov 24   ;;  %s2211_s7 = smov 28  }
 0x159   : > { %380 = vrot.lane.b32.xlu1 %v2395_v13, %s2196_s18  ;;  %1446 = vrot.lane.b32.xlu0 %v2395_v13, %s2197_s20  ;;  %s1784_s18 = sshll.u32 %s2254_s16, 7  ;;  %s200_s20 = scalar_lea.vmem [#allocation8], %s1754_s22 }
 0x15a   : > { %s1654_s16 = scalar_lea.sflag [#allocation5], %s2369_s30 }
 0x1af   : > { %v457_v14 = vpop.permute.xlu1 %456  ;;  %v292_v15 = vpop.permute.xlu0 %291 }
 0x1b0   : > { %1836 = vmatpush3.xpose.msk.msra.mxu1 %vm293_vm3, %v292_v15 }
 0x1b1   : > { %1840 = vmatprep.subr.mxu1 %v2181_v1 }
 0x1b3   : > { %v624_v16 = vpop.permute.xlu1 %623  ;;  %1838 = vmatmul.mubr.msk.f32.vlgmr.msra.gmra.mrb[0].mxu1 %vm293_vm3, %v2395_v13  ;;  %v459_v17 = vpop.permute.xlu0 %458 }
 0x1b4   : > { %1846 = vmatpush3.xpose.msk.msra.mxu0 %vm293_vm3, %v459_v17  ;;  %1842 = vmatprep.mubr.msk.f32.mxu1 %vm2180_vm0, %v2181_v1 }
 0x1b5   : > { %1855 = vmatprep.subr.mxu0 %v2181_v1 }
 0x1b7   : > { %v789_v18 = vpop.permute.xlu1 %788  ;;  %1848 = vmatmul.mubr.msk.f32.vlgmr.msra.gmra.mrb[2].mxu0 %vm293_vm3, %v457_v14  ;;  %v622_v19 = vpop.permute.xlu0 %621 }
 0x1b8   : > { %1856 = vmatpush3.xpose.msk.msra.mxu0 %vm293_vm3, %v624_v16  ;;  %1857 = vmatprep.mubr.msk.f32.mxu0 %vm2180_vm0, %v2181_v1 }
 0x1b9   : > { %1865 = vmatprep.subr.mxu0 %v2181_v1 }
 0x1bb   : > { %v954_v20 = vpop.permute.xlu1 %953  ;;  %1858 = vmatmul.mubr.msk.f32.vlgmr.msra.gmra.mrb[4].mxu0 %vm293_vm3, %v622_v19  ;;  %v787_v21 = vpop.permute.xlu0 %786 }
 0x1bc   : > { %1866 = vmatpush3.xpose.msk.msra.mxu0 %vm293_vm3, %v789_v18  ;;  %1867 = vmatprep.mubr.msk.f32.mxu0 %vm2180_vm0, %v2181_v1 }
 0x1bd   : > { %1875 = vmatprep.subr.mxu0 %v2181_v1 }
 0x1bf   : > { %v1119_v22 = vpop.permute.xlu1 %1118  ;;  %1868 = vmatmul.mubr.msk.f32.vlgmr.msra.gmra.mrb[6].mxu0 %vm293_vm3, %v787_v21  ;;  %v952_v23 = vpop.permute.xlu0 %951 }
 0x1c0   : > { %1876 = vmatpush3.xpose.msk.msra.mxu0 %vm293_vm3, %v954_v20  ;;  %1877 = vmatprep.mubr.msk.f32.mxu0 %vm2180_vm0, %v2181_v1 }
 0x1c1   : > { %1885 = vmatprep.subr.mxu0 %v2181_v1 }
 0x1c3   : > { %v1284_v24 = vpop.permute.xlu1 %1283  ;;  %1878 = vmatmul.mubr.msk.f32.vlgmr.msra.gmra.mrb[8].mxu0 %vm293_vm3, %v952_v23  ;;  %v1117_v25 = vpop.permute.xlu0 %1116 }
 0x1c4   : > { %1886 = vmatpush3.xpose.msk.msra.mxu0 %vm293_vm3, %v1119_v22  ;;  %1887 = vmatprep.mubr.msk.f32.mxu0 %vm2180_vm0, %v2181_v1 }
 0x1c5   : > { %1895 = vmatprep.subr.mxu0 %v2181_v1 }
 0x1c7   : > { %v1449_v26 = vpop.permute.xlu1 %1448  ;;  %1888 = vmatmul.mubr.msk.f32.vlgmr.msra.gmra.mrb[10].mxu0 %vm293_vm3, %v1117_v25  ;;  %v1282_v27 = vpop.permute.xlu0 %1281 }
 0x1c8   : > { %1896 = vmatpush3.xpose.msk.msra.mxu0 %vm293_vm3, %v1284_v24  ;;  %1897 = vmatprep.mubr.msk.f32.mxu0 %vm2180_vm0, %v2181_v1 }
 0x1c9   : > { %1905 = vmatprep.subr.mxu0 %v2181_v1 }
 0x1cb   : > { %v381_v28 = vpop.permute.xlu1 %380  ;;  %1898 = vmatmul.mubr.msk.f32.vlgmr.msra.gmra.mrb[12].mxu0 %vm293_vm3, %v1282_v27  ;;  %v1447_v29 = vpop.permute.xlu0 %1446 }
 0x1cc   : > { %1841 = vmatpush3.msra.mxu1 %v381_v28  ;;  %1906 = vmatpush3.xpose.msk.msra.mxu0 %vm293_vm3, %v1449_v26 }
 0x1cd   : > { %1907 = vmatprep.mubr.msk.f32.mxu0 %vm2180_vm0, %v2181_v1  ;;  %1850 = vmatprep.subr.mxu1 %v2181_v1 }
 0x1cf   : > { %1908 = vmatmul.mubr.msk.f32.vlgmr.msra.gmra.mrb[14].mxu0 %vm293_vm3, %v1447_v29 }
 0x286   : > { %v364_v30 = vpop.f32.mrb[0].mxu1 }
 0x287   : > { %v1839_v31 = vpop.f32.mrb[1].mxu1  ;;  %v369_v32 = vsel %vm368_vm4, %v364_v30, -inf }
 0x288   : > { %370 = vmax.xlane.f32.xlu1 %v369_v32 }
 0x28a   : > { %v530_v33 = vpop.f32.mrb[2].mxu0 }
 0x28b   : > { %v1849_v34 = vpop.f32.mrb[3].mxu0  ;;  %v534_v35 = vsel %vm368_vm4, %v530_v33, -inf }
 0x28c   : > { %535 = vmax.xlane.f32.xlu0 %v534_v35 }
 0x28e   : > { %v695_v36 = vpop.f32.mrb[4].mxu0 }
 0x28f   : > { %v1859_v37 = vpop.f32.mrb[5].mxu0  ;;  %v699_v38 = vsel %vm368_vm4, %v695_v36, -inf }
 0x290   : > { %700 = vmax.xlane.f32.xlu0 %v699_v38 }
 0x292   : > { %v860_v39 = vpop.f32.mrb[6].mxu0 }
 0x293   : > { %v1869_v40 = vpop.f32.mrb[7].mxu0  ;;  %v864_v41 = vsel %vm368_vm4, %v860_v39, -inf }
 0x294   : > { %865 = vmax.xlane.f32.xlu1 %v864_v41 }
 0x296   : > { %v1025_v42 = vpop.f32.mrb[8].mxu0 }
 0x297   : > { %v1879_v43 = vpop.f32.mrb[9].mxu0  ;;  %v1029_v44 = vsel %vm368_vm4, %v1025_v42, -inf }
 0x298   : > { %1030 = vmax.xlane.f32.xlu0 %v1029_v44 }
 0x29a   : > { %v1190_v45 = vpop.f32.mrb[10].mxu0 }
 0x29b   : > { %v1889_v46 = vpop.f32.mrb[11].mxu0  ;;  %v1194_v47 = vsel %vm368_vm4, %v1190_v45, -inf }
 0x29c   : > { %1195 = vmax.xlane.f32.xlu1 %v1194_v47 }
 0x29e   : > { %v1355_v48 = vpop.f32.mrb[12].mxu0 }
 0x29f   : > { %v1899_v49 = vpop.f32.mrb[13].mxu0  ;;  %v1359_v50 = vsel %vm368_vm4, %v1355_v48, -inf }
 0x2a0   : > { %1360 = vmax.xlane.f32.xlu0 %v1359_v50 }
 0x2a2   : > { %v1520_v51 = vpop.f32.mrb[14].mxu0 }
 0x2a3   : > { %v1909_v52 = vpop.f32.mrb[15].mxu0  ;;  %v1524_v53 = vsel %vm368_vm4, %v1520_v51, -inf }
 0x2ad   : > { %710 = vrot.lane.b32.xlu1 %v2395_v13, %s2198_s4  ;;  %s1667_s4 = sshll.u32 %s200_s20, 4  ;;  %s2537_s4 = int_to_ptr.vmem [resolvable:$true] %s1667_s4 }
 0x2ae   : > { %s2103_s22 = scalar_lea.vmem %s2537_s4, 128 }
 0x2af   : > { %p2104_p4 = scmp.ne.s32.totalorder %s2537_s4, %s2103_s22 }
 0x2b1   : > { %p2105_p6 = pnand %p2104_p4, %p2324_p12 }
 0x2b3   : > { %p2106_p8 = pneg %p2105_p6 }
 0x2b6   : > { %545 = vrot.lane.b32.xlu0 %v2395_v13, %s2199_s25 }
 0x2d1   : > { %1525 = vmax.xlane.f32.xlu1 %v1524_v53 }
 0x2e2   : > { %875 = vrot.lane.b32.xlu1 %v2395_v13, %s2200_s26 }
 0x315   : > { %v371_v54 = vpop.xlane.xlu1 %370 }
 0x316   : > { %v372_v55 = vsub.f32 %v364_v30, %v371_v54 }
 0x318   : > { %v373_v56 = vmul.f32 1.442695, %v372_v55 }
 0x319   : > { %v536_v57 = vpop.xlane.xlu0 %535 }
 0x31a   : > { %2013 = vpow2.f32 %v373_v56  ;;  %v537_v58 = vsub.f32 %v530_v33, %v536_v57 }
 0x31c   : > { %v538_v59 = vmul.f32 1.442695, %v537_v58 }
 0x31d   : > { %v701_v60 = vpop.xlane.xlu0 %700 }
 0x31e   : > { %2015 = vpow2.f32 %v538_v59  ;;  %v702_v61 = vsub.f32 %v695_v36, %v701_v60 }
 0x320   : > { %v703_v62 = vmul.f32 1.442695, %v702_v61 }
 0x321   : > { %v866_v6 = vpop.xlane.xlu1 %865 }
 0x322   : > { %2017 = vpow2.f32 %v703_v62  ;;  %v867_v7 = vsub.f32 %v860_v39, %v866_v6 }
 0x324   : > { %v2014_v63 = vpop.eup %2013  ;;  %v868_v11 = vmul.f32 1.442695, %v867_v7 }
 0x325   : > { %v375_v0 = vsel %vm368_vm4, %v2014_v63, 0.0  ;;  %v1031_v8 = vpop.xlane.xlu0 %1030 }
 0x326   : > { %376 = vadd.xlane.f32.xlu0 %v375_v0  ;;  %v1032_v10 = vsub.f32 %v1025_v42, %v1031_v8  ;;  %2019 = vpow2.f32 %v868_v11 }
 0x328   : > { %v2464_v2 = vpop.eup %2015  ;;  %v1033_v15 = vmul.f32 1.442695, %v1032_v10 }
 0x329   : > { %v540_v3 = vsel %vm368_vm4, %v2464_v2, 0.0  ;;  %v1196_v9 = vpop.xlane.xlu1 %1195 }
 0x32a   : > { %541 = vadd.xlane.f32.xlu1 %v540_v3  ;;  %v1197_v12 = vsub.f32 %v1190_v45, %v1196_v9  ;;  %2021 = vpow2.f32 %v1033_v15 }
 0x32c   : > { %v2468_v4 = vpop.eup %2017  ;;  %v1198_v16 = vmul.f32 1.442695, %v1197_v12 }
 0x32d   : > { %v705_v5 = vsel %vm368_vm4, %v2468_v4, 0.0  ;;  %v1361_v14 = vpop.xlane.xlu0 %1360  ;;  %v711_v19 = vpop.permute.xlu1 %710 }
 0x32e   : > { %706 = vadd.xlane.f32.xlu0 %v705_v5  ;;  %v1362_v17 = vsub.f32 %v1355_v48, %v1361_v14  ;;  %2023 = vpow2.f32 %v1198_v16 }
 0x330   : > { %v1363_v18 = vmul.f32 1.442695, %v1362_v17  ;;  %v2020_v20 = vpop.eup %2019 }
 0x331   : > { %v870_v23 = vsel %vm368_vm4, %v2020_v20, 0.0  ;;  %v546_v33 = vpop.permute.xlu0 %545 }
 0x332   : > { %2025 = vpow2.f32 %v1363_v18 }
 0x334   : > { %v2474_v21 = vpop.eup %2021 }
 0x335   : > { %v1035_v27 = vsel %vm368_vm4, %v2474_v21, 0.0 }
 0x338   : > { %v2477_v24 = vpop.eup %2023 }
 0x339   : > { %v1200_v28 = vsel %vm368_vm4, %v2477_v24, 0.0 }
 0x33b   : > { %1040 = vrot.lane.b32.xlu1 %v2395_v13, %s2201_s5  ;;  %s2535_s5 = scalar_lea.hbm %s2583_s3, %s1784_s18 }
 0x33c   : > { %v2483_v29 = vpop.eup %2025 }
 0x33d   : > { %v1365_v30 = vsel %vm368_vm4, %v2483_v29, 0.0 }
 0x344   : > { %1205 = vrot.lane.b32.xlu0 %v2395_v13, %s2202_s8  ;;  %s2212_s8 = smov [#allocation8]  }
 0x35e   : > { %v1526_v22 = vpop.xlane.xlu1 %1525 }
 0x35f   : > { %v1527_v25 = vsub.f32 %v1520_v51, %v1526_v22  ;;  %871 = vadd.xlane.f32.xlu1 %v870_v23 }
 0x361   : > { %v1528_v26 = vmul.f32 1.442695, %v1527_v25 }
 0x362   : > { %v876_v34 = vpop.permute.xlu1 %875 }
 0x363   : > { %2027 = vpow2.f32 %v1528_v26  ;;  %1036 = vadd.xlane.f32.xlu0 %v1035_v27  ;;  %1201 = vadd.xlane.f32.xlu1 %v1200_v28 }
 0x367   : > { %1366 = vadd.xlane.f32.xlu0 %v1365_v30 }
 0x36d   : > { %v2487_v31 = vpop.eup %2027 }
 0x36e   : > { %v1530_v32 = vsel %vm368_vm4, %v2487_v31, 0.0 }
 0x36f   : > { %1531 = vadd.xlane.f32.xlu0 %v1530_v32 }
 0x374   : > { %1370 = vrot.lane.b32.xlu1 %v2395_v13, %s2203_s9  ;;  %s2107_s9 = sshll.u32 %s2212_s8, 4  ;;  %s2108_s9 = int_to_ptr.vmem [resolvable:$false] %s2107_s9 }
 0x375   : > { %p2110_p10 = scmp.lt.s32.totalorder %s2537_s4, %s2108_s9 }
 0x385   : > { %1535 = vrot.lane.b32.xlu0 %v2395_v13, %s2204_s10  ;;  %s2109_s10 = scalar_lea.vmem %s2108_s9, 256 }
 0x386   : > { %p2111_p13 = scmp.lt.s32.totalorder %s2109_s10, %s2103_s22 }
 0x388   : > { %p2112_p3 = por %p2111_p13, %p2110_p10 }
 0x38a   : > { %p2113_p7 = pnand %p2112_p3, %p2106_p8 }
 0x3b3   : > { %v377_v35 = vpop.xlane.xlu0 %376 }
 0x3b4   : > { %2029 = vrcp.f32 %v377_v35 }
 0x3b7   : > { %v542_v36 = vpop.xlane.xlu1 %541 }
 0x3b8   : > { %2031 = vrcp.f32 %v542_v36 }
 0x3bb   : > { %v707_v37 = vpop.xlane.xlu0 %706  ;;  %v1041_v43 = vpop.permute.xlu1 %1040 }
 0x3bc   : > { %2033 = vrcp.f32 %v707_v37 }
 0x3be   : > { %v2030_v38 = vpop.eup %2029 }
 0x3bf   : > { %v379_v39 = vmul.f32 %v2030_v38, %v2014_v63  ;;  %v1206_v44 = vpop.permute.xlu0 %1205 }
 0x3c1   : > { %1843 = vmatmul.mubr.msk.f32.vlgmr.msra.gmra.mrb[2].mxu1 %vm368_vm4, %v379_v39 }
 0x3c2   : > { %v2032_v40 = vpop.eup %2031  ;;  %1851 = vmatpush3.msra.mxu1 %v546_v33  ;;  %1852 = vmatprep.mubr.msk.f32.mxu1 %vm2180_vm0, %v2181_v1 }
 0x3c3   : > { %v544_v41 = vmul.f32 %v2032_v40, %v2464_v2  ;;  %1860 = vmatprep.subr.mxu1 %v2181_v1 }
 0x3c5   : > { %1853 = vmatmul.mubr.msk.f32.vlgmr.msra.gmra.mrb[4].mxu1 %vm368_vm4, %v544_v41 }
 0x3c6   : > { %v2034_v13 = vpop.eup %2033  ;;  %1861 = vmatpush3.msra.mxu1 %v711_v19  ;;  %1862 = vmatprep.mubr.msk.f32.mxu1 %vm2180_vm0, %v2181_v1 }
 0x3c7   : > { %v709_v42 = vmul.f32 %v2034_v13, %v2468_v4  ;;  %1870 = vmatprep.subr.mxu1 %v2181_v1 }
 0x3c9   : > { %1863 = vmatmul.mubr.msk.f32.vlgmr.msra.gmra.mrb[6].mxu1 %vm368_vm4, %v709_v42 }
 0x3ca   : > { %1871 = vmatpush3.msra.mxu1 %v876_v34  ;;  %1872 = vmatprep.mubr.msk.f32.mxu1 %vm2180_vm0, %v2181_v1 }
 0x3cb   : > { %1880 = vmatprep.subr.mxu1 %v2181_v1 }
 0x3ec   : > { %v872_v45 = vpop.xlane.xlu1 %871 }
 0x3ed   : > { %2035 = vrcp.f32 %v872_v45 }
 0x3f0   : > { %v1037_v46 = vpop.xlane.xlu0 %1036  ;;  %v1202_v47 = vpop.xlane.xlu1 %1201 }
 0x3f1   : > { %2037 = vrcp.f32 %v1037_v46 }
 0x3f2   : > { %2039 = vrcp.f32 %v1202_v47 }
 0x3f4   : > { %v1367_v48 = vpop.xlane.xlu0 %1366  ;;  %v1371_v57 = vpop.permute.xlu1 %1370 }
 0x3f5   : > { %2041 = vrcp.f32 %v1367_v48 }
 0x3f7   : > { %v2036_v49 = vpop.eup %2035 }
 0x3f8   : > { %v874_v50 = vmul.f32 %v2036_v49, %v2020_v20 }
 0x3fa   : > { %1873 = vmatmul.mubr.msk.f32.vlgmr.msra.gmra.mrb[8].mxu1 %vm368_vm4, %v874_v50 }
 0x3fb   : > { %v2038_v51 = vpop.eup %2037  ;;  %1881 = vmatpush3.msra.mxu1 %v1041_v43  ;;  %1882 = vmatprep.mubr.msk.f32.mxu1 %vm2180_vm0, %v2181_v1 }
 0x3fc   : > { %v1039_v52 = vmul.f32 %v2038_v51, %v2474_v21  ;;  %v1532_v53 = vpop.xlane.xlu0 %1531  ;;  %1890 = vmatprep.subr.mxu1 %v2181_v1  ;;  %v2040_v54 = vpop.eup %2039 }
 0x3fd   : > { %2043 = vrcp.f32 %v1532_v53  ;;  %v1204_v55 = vmul.f32 %v2040_v54, %v2477_v24 }
 0x3fe   : > { %1883 = vmatmul.mubr.msk.f32.vlgmr.msra.gmra.mrb[10].mxu1 %vm368_vm4, %v1039_v52 }
 0x3ff   : > { %1891 = vmatpush3.msra.mxu1 %v1206_v44  ;;  %1892 = vmatprep.mubr.msk.f32.mxu1 %vm2180_vm0, %v2181_v1  ;;  %v2042_v56 = vpop.eup %2041 }
 0x400   : > { %1900 = vmatprep.subr.mxu1 %v2181_v1  ;;  %v1369_v58 = vmul.f32 %v2042_v56, %v2483_v29  ;;  %v1536_v59 = vpop.permute.xlu0 %1535 }
 0x402   : > { %1893 = vmatmul.mubr.msk.f32.vlgmr.msra.gmra.mrb[12].mxu1 %vm368_vm4, %v1204_v55 }
 0x403   : > { %1901 = vmatpush3.msra.mxu1 %v1371_v57  ;;  %1902 = vmatprep.mubr.msk.f32.mxu1 %vm2180_vm0, %v2181_v1 }
 0x404   : > { %1910 = vmatprep.subr.mxu1 %v2181_v1 }
 0x406   : > { %1903 = vmatmul.mubr.msk.f32.vlgmr.msra.gmra.mrb[14].mxu1 %vm368_vm4, %v1369_v58 }
 0x407   : > { %v2044_v60 = vpop.eup %2043  ;;  %1911 = vmatpush3.msra.mxu1 %v1536_v59  ;;  %1912 = vmatprep.mubr.msk.f32.mxu1 %vm2180_vm0, %v2181_v1 }
 0x408   : > { %v1534_v61 = vmul.f32 %v2044_v60, %v2487_v31 }
 0x40a   : > { %1913 = vmatmul.mubr.msk.f32.vlgmr.msra.gmra.mrb[16].mxu1 %vm368_vm4, %v1534_v61 }
 0x494   : > { %v452_v62 = vpop.f32.mrb[2].mxu1 }
 0x495   : > { %v1844_v63 = vpop.f32.mrb[3].mxu1 }
 0x498   : > { %v617_v0 = vpop.f32.mrb[4].mxu1 }
 0x499   : > { %1612 = vrot.lane.b32.xlu1 %v617_v0, %s2205_s11  ;;  %v1854_v2 = vpop.f32.mrb[5].mxu1 }
 0x49c   : > { %v782_v3 = vpop.f32.mrb[6].mxu1 }
 0x49d   : > { %1616 = vrot.lane.b32.xlu0 %v782_v3, %s2206_s27  ;;  %v1864_v4 = vpop.f32.mrb[7].mxu1 }
 0x4cd   : > { %v947_v5 = vpop.f32.mrb[8].mxu1 }
 0x4ce   : > { %1620 = vrot.lane.b32.xlu1 %v947_v5, %s2207_s28  ;;  %v1874_v6 = vpop.f32.mrb[9].mxu1 }
 0x4d1   : > { %v1112_v7 = vpop.f32.mrb[10].mxu1 }
 0x4d2   : > { %1624 = vrot.lane.b32.xlu0 %v1112_v7, %s2208_s29  ;;  %v1884_v1 = vpop.f32.mrb[11].mxu1 }
 0x4d5   : > { %v1277_v8 = vpop.f32.mrb[12].mxu1 }
 0x4d6   : > { %1628 = vrot.lane.b32.xlu1 %v1277_v8, %s2209_s23  ;;  %v1894_v9 = vpop.f32.mrb[13].mxu1 }
 0x4d9   : > { %v1442_v10 = vpop.f32.mrb[14].mxu1 }
 0x4da   : > { %1632 = vrot.lane.b32.xlu0 %v1442_v10, %s2210_s6  ;;  %v1904_v11 = vpop.f32.mrb[15].mxu1 }
 0x4dd   : > { %v1607_v12 = vpop.f32.mrb[16].mxu1 }
 0x4de   : > { %1636 = vrot.lane.b32.xlu1 %v1607_v12, %s2211_s7  ;;  %v1914_v14 = vpop.f32.mrb[17].mxu1 }
 0x50b   : > { %v1613_v15 = vpop.permute.xlu1 %1612 }
 0x50c   : > { %v1639_v19 = vsel %vm293_vm3, %v452_v62, %v1613_v15 }
 0x50f   : > { %v1617_v16 = vpop.permute.xlu0 %1616 }
 0x510   : > { %v1640_v20 = vsel %vm368_vm4, %v1639_v19, %v1617_v16 }
 0x540   : > { %v1621_v17 = vpop.permute.xlu1 %1620 }
 0x541   : > { %v1642_v22 = vsel %vm1641_vm5, %v1640_v20, %v1621_v17 }
 0x544   : > { %v1625_v18 = vpop.permute.xlu0 %1624 }
 0x545   : > { %v1644_v24 = vsel %vm1643_vm6, %v1642_v22, %v1625_v18 }
 0x548   : > { %v1629_v21 = vpop.permute.xlu1 %1628 }
 0x549   : > { %v1646_v25 = vsel %vm1645_vm7, %v1644_v24, %v1629_v21 }
 0x54c   : > { %v1633_v23 = vpop.permute.xlu0 %1632 }
 0x54d   : > { %v1648_v26 = vsel %vm1647_vm8, %v1646_v25, %v1633_v23 }
 0x550   : > { %v1637_v27 = vpop.permute.xlu1 %1636 }
 0x551   : > { %v1650_v28 = vsel %vm1649_vm9, %v1648_v26, %v1637_v27 }
 0x552   : > { %v1651_v29 = vsel %vm213_vm1, %v1650_v28, 0.0 }
 0x553   : > { %1652 = vst [vmem:[%s200_s20] sm:$0xff] %v1651_v29 }
 0x554   : > { %2116 = shalt.err (!%p2113_p7)
}
 0x555   : > { %s2117_s30 = scalar_lea.hbm %s2535_s5, 128  ;;  %s2121_s28 = scalar_lea.hbm %s2583_s3, 256 }
 0x556   : > { %p2118_p9 = scmp.ne.s32.totalorder %s2535_s5, %s2117_s30  ;;  %p2122_p0 = scmp.lt.u32.totalorder %s2535_s5, %s2583_s3 }
 0x557   : > { %p2123_p11 = scmp.lt.u32.totalorder %s2121_s28, %s2117_s30  ;;  %p2125_p4 = scmp.lt.u32.totalorder %s2117_s30, %s2535_s5 }
 0x558   : > { %p2119_p2 = pnand %p2118_p9, %p2324_p12 }
 0x559   : > { %p2124_p1 = por %p2123_p11, %p2122_p0 }
 0x55a   : > { %p2120_p5 = pneg %p2119_p2 }
 0x55b   : > { %p2126_p6 = por %p2125_p4, %p2124_p1 }
 0x55d   : > { %p2127_p8 = pnand %p2126_p6, %p2120_p5 }
 0x55f   : > { %2130 = shalt.err (!%p2127_p8)
}
 0x560   : > { %1927 = dma.vmem_to_hbm [thread:$0]  (%p2324_p12), %s2537_s4, 128, %s2535_s5, %s1654_s16  }
 0x561 PF: > { %s1679_s6 = sand.u32 1, %s2161_s12   ;;  %p2598_p10 = scmp.ne.s32.totalorder %s2588_s19, 0 }
 0x562   : > { %p2599_p13 = scmp.ge.s32.totalorder %s2173_s15, 2  ;;  %s1680_s7 = scalar_lea.sflag [#allocation5], %s1679_s6 }
 0x564   : > { %p1938_p3 = pnand %p2599_p13, %p2598_p10 }
 0x566   : > { %2156 = dma.done.wait (!%p1938_p3), %s1680_s7, 128  }
 0x567   : > { %2158 = vsyncadd (!%p1938_p3), %s1680_s7, 4294967168  ;;  %p17_p7 = scmp.ge.s32.totalorder %s2289_s24, 4   ;;  %s2600_s12 = smov %s2165_s13 }
 0x568   : > { %s2601_s13 = smov %s2169_s14  ;;  %s2602_s14 = smov %s2320_s17 }
 0x569   : > { %s2603_s15 = smov %s2289_s24  ;;  %19 = sbr.rel (!%p17_p7) target bundleno = 6 (0x6), region = 81 }
 0x570   :  { %1685 = vsyncpa [#allocation4], 1 }
 0x571   :  { %1687 = vsyncpa [#allocation4 + $0x1], 1 }
 0x572   :  { %1688 = vsyncpa [#allocation7], 1 }
 0x573   :  { %1689 = vsyncpa [#allocation5], 1 }
 0x574   :  { %1691 = vsyncpa [#allocation5 + $0x1], 1 }

</bundles_post_ra>
